<compile_context>
chip_gen: v5e
topology: v5e:2x2
jax: 0.10.0
libtpu: 0.0.40
codegen_flags: <defaults>
</compile_context>

<pallas_src>
import jax
import jax.numpy as jnp
from jax.experimental import pallas as pl
from jax.experimental.pallas import tpu as pltpu


def _mish_kernel(x_ref, o_ref):
    x = x_ref[...].astype(jnp.float32)
    # tanh(softplus(x)) with e^sp = 1 + e^x, rearranged via t = exp(-|x|):
    #   x >= 0: (1 + 2t)   / (1 + 2t + 2t^2)
    #   x <  0: (2t + t^2) / (2 + 2t + t^2)
    # -> single EUP exp per element; divide is full-precision (rcp + Newton).
    t = jnp.exp(-jnp.abs(x))
    t2 = t * t
    pos = x >= 0.0
    num = jnp.where(pos, 1.0 + 2.0 * t, 2.0 * t + t2)
    den = jnp.where(pos, 1.0 + 2.0 * t + 2.0 * t2, 2.0 + 2.0 * t + t2)
    o_ref[...] = (x * (num / den)).astype(o_ref.dtype)


def mish_naive_pallas(x, block_rows=2048):
    """Mish(x) = x * tanh(softplus(x)), elementwise, any shape/dtype."""
    orig_shape = x.shape
    orig_dtype = x.dtype
    total = int(x.size)
    LANES = 128

    # Lane-dense layout: rows of 128, sublane-aligned (multiple of 8 rows).
    rows = -(-total // LANES)              # ceil
    rows8 = ((rows + 7) // 8) * 8

    # Block rows: multiple of 8 (also a multiple of 16 by default -> bf16 safe),
    # clamped so tiny inputs don't get padded to a full 1 MiB block.
    block_rows = max(8, (int(block_rows) // 8) * 8)
    block_rows = min(block_rows, rows8)

    padded_rows = ((rows8 + block_rows - 1) // block_rows) * block_rows
    padded_total = padded_rows * LANES

    x_flat = x.reshape(-1)
    if padded_total != total:
        x_flat = jnp.pad(x_flat, (0, padded_total - total))
    x2 = x_flat.reshape(padded_rows, LANES)

    grid = (padded_rows // block_rows,)
    blk = (block_rows, LANES)
    itemsize = jnp.dtype(orig_dtype).itemsize

    cost = pl.CostEstimate(
        flops=12 * padded_total,
        transcendentals=padded_total,           # one exp per element
        bytes_accessed=2 * padded_total * itemsize,
    )

    out = pl.pallas_call(
        _mish_kernel,
        out_shape=jax.ShapeDtypeStruct((padded_rows, LANES), orig_dtype),
        grid_spec=pltpu.PrefetchScalarGridSpec(
            num_scalar_prefetch=0,
            grid=grid,
            in_specs=[pl.BlockSpec(blk, lambda i: (i, 0))],
            out_specs=pl.BlockSpec(blk, lambda i: (i, 0)),
        ),
        compiler_params=pltpu.CompilerParams(
            dimension_semantics=("parallel",),
        ),
        cost_estimate=cost,
    )(x2)

    out_flat = out.reshape(-1)
    if padded_total != total:
        out_flat = out_flat[:total]
    return out_flat.reshape(orig_shape)


def mish_naive_ref(x):
    """Reference: x * tanh(softplus(x)) with the classic stable softplus."""
    xf = x.astype(jnp.float32)
    sp = jnp.log1p(jnp.exp(-jnp.abs(xf))) + jnp.maximum(xf, 0.0)
    return (xf * jnp.tanh(sp)).astype(x.dtype)


if __name__ == "__main__":
    key = jax.random.PRNGKey(0)

    # NCHW, matching PyTorch conv-activation convention.
    x = jax.random.normal(key, (2, 4, 16, 16), dtype=jnp.float32) * 3.0
    y = jax.block_until_ready(mish_naive_pallas(x))
    y_ref = mish_naive_ref(x)
    assert y.shape == x.shape and y.dtype == x.dtype
    assert jnp.allclose(y, y_ref, atol=1e-5, rtol=1e-5)

    # Odd-sized input (not a multiple of 128) exercises the pad-and-tile path.
    x2 = jax.random.normal(jax.random.PRNGKey(1), (2, 3, 7, 5), dtype=jnp.float32) * 5.0
    y2 = jax.block_until_ready(mish_naive_pallas(x2))
    y2_ref = mish_naive_ref(x2)
    assert y2.shape == x2.shape and y2.dtype == x2.dtype
    assert jnp.allclose(y2, y2_ref, atol=1e-5, rtol=1e-5)

    print("KERNEL_OK")
</pallas_src>

<mosaic_0001>
module attributes {stable_mosaic.version = 11 : i64} {
  func.func @_mish_kernel(%arg0: i32, %arg1: memref<16x128xf32, #tpu.memory_space<vmem>>, %arg2: memref<16x128xf32, #tpu.memory_space<vmem>>) attributes {dimension_semantics = [#tpu.dimension_semantics<parallel>], iteration_bounds = array<i64: 1>, scalar_prefetch = 0 : i64, scratch_operands = 0 : i64, tpu.core_type = #tpu.core_type<tc>, window_params = [{transform_indices = @transform_0, window_bounds = array<i64: 16, 128>}, {transform_indices = @transform_1, window_bounds = array<i64: 16, 128>}]} {
    %c0 = arith.constant 0 : index
    %c0_0 = arith.constant 0 : index
    %0 = vector.load %arg1[%c0, %c0_0] : memref<16x128xf32, #tpu.memory_space<vmem>>, vector<16x128xf32>
    %1 = math.absf %0 : vector<16x128xf32>
    %cst = arith.constant 0.000000e+00 : f32
    %2 = vector.broadcast %cst : f32 to vector<16x128xf32>
    %3 = arith.subf %2, %1 : vector<16x128xf32>
    %4 = math.exp %3 : vector<16x128xf32>
    %5 = arith.mulf %4, %4 : vector<16x128xf32>
    %cst_1 = arith.constant 0.000000e+00 : f32
    %6 = vector.broadcast %cst_1 : f32 to vector<16x128xf32>
    %7 = arith.cmpf oge, %0, %6 : vector<16x128xf32>
    %cst_2 = arith.constant 2.000000e+00 : f32
    %8 = vector.broadcast %cst_2 : f32 to vector<16x128xf32>
    %9 = arith.mulf %8, %4 : vector<16x128xf32>
    %cst_3 = arith.constant 1.000000e+00 : f32
    %10 = vector.broadcast %cst_3 : f32 to vector<16x128xf32>
    %11 = arith.addf %10, %9 : vector<16x128xf32>
    %cst_4 = arith.constant 2.000000e+00 : f32
    %12 = vector.broadcast %cst_4 : f32 to vector<16x128xf32>
    %13 = arith.mulf %12, %4 : vector<16x128xf32>
    %14 = arith.addf %13, %5 : vector<16x128xf32>
    %15 = arith.select %7, %11, %14 : vector<16x128xi1>, vector<16x128xf32>
    %cst_5 = arith.constant 2.000000e+00 : f32
    %16 = vector.broadcast %cst_5 : f32 to vector<16x128xf32>
    %17 = arith.mulf %16, %4 : vector<16x128xf32>
    %cst_6 = arith.constant 1.000000e+00 : f32
    %18 = vector.broadcast %cst_6 : f32 to vector<16x128xf32>
    %19 = arith.addf %18, %17 : vector<16x128xf32>
    %cst_7 = arith.constant 2.000000e+00 : f32
    %20 = vector.broadcast %cst_7 : f32 to vector<16x128xf32>
    %21 = arith.mulf %20, %5 : vector<16x128xf32>
    %22 = arith.addf %19, %21 : vector<16x128xf32>
    %cst_8 = arith.constant 2.000000e+00 : f32
    %23 = vector.broadcast %cst_8 : f32 to vector<16x128xf32>
    %24 = arith.mulf %23, %4 : vector<16x128xf32>
    %cst_9 = arith.constant 2.000000e+00 : f32
    %25 = vector.broadcast %cst_9 : f32 to vector<16x128xf32>
    %26 = arith.addf %25, %24 : vector<16x128xf32>
    %27 = arith.addf %26, %5 : vector<16x128xf32>
    %28 = arith.select %7, %22, %27 : vector<16x128xi1>, vector<16x128xf32>
    %29 = arith.divf %15, %28 : vector<16x128xf32>
    %30 = arith.mulf %0, %29 : vector<16x128xf32>
    %c0_10 = arith.constant 0 : index
    %c0_11 = arith.constant 0 : index
    %31 = vector.load %arg2[%c0_10, %c0_11] : memref<16x128xf32, #tpu.memory_space<vmem>>, vector<16x128xf32>
    tpu.vector_store %arg2[%c0_10, %c0_11], %30 {strides = array<i32>} : memref<16x128xf32, #tpu.memory_space<vmem>>, vector<16x128xf32>,
    return
  }
  func.func @transform_0(%arg0: i32) -> (i32, i32) {
    %c0_i32 = arith.constant 0 : i32
    %c0_i32_0 = arith.constant 0 : i32
    return %arg0, %c0_i32 : i32, i32
  }
  func.func @transform_1(%arg0: i32) -> (i32, i32) {
    %c0_i32 = arith.constant 0 : i32
    %c0_i32_0 = arith.constant 0 : i32
    return %arg0, %c0_i32 : i32, i32
  }
}

</mosaic_0001>

<bundles_post_ra>
// kernel: tpu_custom_call.1
= control target key start
LH: loop header
LB: loop body
LE: loop exit
PB: predicated region body
PF: predicated region fallthrough
CT: control target
= control target key end

     0   :  { %6 = vsyncpa [#allocation3], 0  ;;  %s218_s0 = inlined_call_operand.hbm [shape: f32[16,128], index: 0, kind: input, shape index: {}]   ;;  %s219_s1 = inlined_call_operand.hbm [shape: f32[16,128], index: 1, kind: output, shape index: {}]  }
   0x1   :  { %7 = vsyncpa [#allocation4], 0  ;;  %s12_s8 = sshll.u32 %s218_s0, 4  ;;  %s174_s9 = smov [#allocation2]   ;;  %s13_s8 = int_to_ptr.hbm [resolvable:$true] %s12_s8 }
   0x2   :  { %s14_s10 = sshll.u32 %s174_s9, 4  ;;  %s175_s11 = smov 128   ;;  %s15_s10 = int_to_ptr.vmem [resolvable:$true] %s14_s10 }
   0x3   :  { %s176_s12 = smov 8  }
   0x4   :  { %20 = dma.hbm_to_vmem [thread:$0]  %s13_s8, 256, %s15_s10, [#allocation3], %s175_s11, %s175_s11, %s176_s12  }
   0x5   :  { %170 = dma.done.wait [#allocation3], 256  }
   0x6   :  { %171 = vsyncadd [#allocation3], 4294967040  ;;  %v194_v0 = vld [vmem:[#allocation2] sm:$0xff]  ;;  %v196_v1 = vld [vmem:[#allocation2 + $0x8] sm:$0xff]  ;;  %s177_s0 = smov [#allocation5]   ;;  %s97_s16 = sshll.u32 %s219_s1, 4  ;;  %s98_s16 = int_to_ptr.hbm [resolvable:$true] %s97_s16 }
   0x7   :  { %v27_v2 = vand.u32 2147483647, %v194_v0  ;;  %v28_v3 = vand.u32 2147483647, %v196_v1  ;;  %vm37_vm0 = vcmp.ge.f32.partialorder %v194_v0, 0.0  ;;  %vm38_vm1 = vcmp.ge.f32.partialorder %v196_v1, 0.0 }
   0x8   :  { %s95_s13 = sshll.u32 %s177_s0, 4  ;;  %s96_s13 = int_to_ptr.vmem [resolvable:$true] %s95_s13 }
   0x9   :  { %v29_v4 = vsub.f32 0.0, %v27_v2  ;;  %v30_v5 = vsub.f32 0.0, %v28_v3 }
   0xb   :  { %v31_v6 = vmul.f32 1.442695, %v29_v4  ;;  %v33_v7 = vmul.f32 1.442695, %v30_v5 }
   0xd   :  { %114 = vpow2.f32 %v31_v6 }
   0xe   :  { %116 = vpow2.f32 %v33_v7 }
  0x13   :  { %v115_v8 = vpop.eup %114 }
  0x14   :  { %v117_v9 = vpop.eup %116  ;;  %v35_v10 = vmul.f32 %v115_v8, %v115_v8  ;;  %v39_v11 = vmul.f32 2.0, %v115_v8 }
  0x15   :  { %v36_v12 = vmul.f32 %v117_v9, %v117_v9  ;;  %v40_v13 = vmul.f32 2.0, %v117_v9 }
  0x16   :  { %v41_v14 = vadd.f32 1.0, %v39_v11  ;;  %v47_v15 = vmul.f32 2.0, %v35_v10  ;;  %v51_v16 = vadd.f32 2.0, %v39_v11  ;;  %v43_v33 = vadd.f32 %v39_v11, %v35_v10 }
  0x17   :  { %v42_v17 = vadd.f32 1.0, %v40_v13  ;;  %v48_v18 = vmul.f32 2.0, %v36_v12  ;;  %v52_v19 = vadd.f32 2.0, %v40_v13  ;;  %v44_v39 = vadd.f32 %v40_v13, %v36_v12 }
  0x18   :  { %v49_v20 = vadd.f32 %v47_v15, %v41_v14  ;;  %v53_v21 = vadd.f32 %v51_v16, %v35_v10  ;;  %v45_v42 = vsel %vm37_vm0, %v41_v14, %v43_v33 }
  0x19   :  { %v50_v22 = vadd.f32 %v48_v18, %v42_v17  ;;  %v54_v23 = vadd.f32 %v52_v19, %v36_v12  ;;  %v46_v47 = vsel %vm38_vm1, %v42_v17, %v44_v39 }
  0x1a   :  { %v55_v24 = vsel %vm37_vm0, %v49_v20, %v53_v21 }
  0x1b   :  { %118 = vrcp.f32 %v55_v24  ;;  %v56_v25 = vsel %vm38_vm1, %v50_v22, %v54_v23  ;;  %vm62_vm2 = vweird.f32 %v55_v24  ;;  %v68_v29 = vand.u32 2147483648, %v55_v24 }
  0x1c   :  { %120 = vrcp.f32 %v56_v25  ;;  %v66_v31 = vand.u32 2147483647, %v55_v24  ;;  %vm77_vm4 = vweird.f32 %v56_v25  ;;  %v83_v34 = vand.u32 2147483648, %v56_v25 }
  0x1d   :  { %v81_v37 = vand.u32 2147483647, %v56_v25  ;;  %v69_v38 = vor.u32 1.1754944e-38, %v68_v29 }
  0x1e   :  { %vm67_vm7 = vcmp.eq.f32.partialorder %v66_v31, 8.507059e+37  ;;  %v84_v43 = vor.u32 1.1754944e-38, %v83_v34 }
  0x1f   :  { %vm82_vm9 = vcmp.eq.f32.partialorder %v81_v37, 8.507059e+37 }
  0x21   :  { %v119_v26 = vpop.eup %118 }
  0x22   :  { %v58_v27 = vmul.f32 %v119_v26, %v55_v24  ;;  %v121_v28 = vpop.eup %120  ;;  %vm63_vm3 = vweird.f32 %v119_v26 }
  0x23   :  { %v73_v32 = vmul.f32 %v121_v28, %v56_v25  ;;  %vm78_vm5 = vweird.f32 %v121_v28  ;;  %vm64_vm6 = vmor %vm62_vm2, %vm63_vm3 }
  0x24   :  { %v59_v30 = vsub.f32 1.0, %v58_v27  ;;  %vm79_vm8 = vmor %vm77_vm4, %vm78_vm5 }
  0x25   :  { %v74_v36 = vsub.f32 1.0, %v73_v32 }
  0x26   :  { %v60_v35 = vmul.f32 %v119_v26, %v59_v30 }
  0x27   :  { %v75_v41 = vmul.f32 %v121_v28, %v74_v36 }
  0x28   :  { %v61_v40 = vadd.f32 %v119_v26, %v60_v35 }
  0x29   :  { %v76_v45 = vadd.f32 %v121_v28, %v75_v41 }
  0x2a   :  { %v65_v44 = vsel %vm64_vm6, %v119_v26, %v61_v40 }
  0x2b   :  { %v70_v46 = vsel %vm67_vm7, %v69_v38, %v65_v44  ;;  %v80_v49 = vsel %vm79_vm8, %v121_v28, %v76_v45 }
  0x2c   :  { %v71_v48 = vmul.f32 %v70_v46, %v45_v42  ;;  %v85_v50 = vsel %vm82_vm9, %v84_v43, %v80_v49 }
  0x2d   :  { %v86_v52 = vmul.f32 %v85_v50, %v46_v47 }
  0x2e   :  { %v87_v51 = vmul.f32 %v71_v48, %v194_v0 }
  0x2f   :  { %v88_v53 = vmul.f32 %v86_v52, %v196_v1 }
  0x30   :  { %89 = vst [vmem:[#allocation5] sm:$0xff] %v87_v51 }
  0x31   :  { %90 = vst [vmem:[#allocation5 + $0x8] sm:$0xff] %v88_v53 }
  0x32   :  { %103 = dma.vmem_to_hbm [thread:$0]  %s96_s13, 256, %s98_s16, [#allocation4], %s175_s11, %s175_s11, %s176_s12  }
  0x33   :  { %172 = dma.done.wait [#allocation4], 256  }
  0x34   :  { %173 = vsyncadd [#allocation4], 4294967040 }
  0x35   :  { %108 = vsyncpa [#allocation3], 1 }
  0x36   :  { %109 = vsyncpa [#allocation4], 1 }

</bundles_post_ra>
